<compile_context>
chip_gen: v5e
topology: v5e:2x2
jax: 0.10.0
libtpu: 0.0.40
codegen_flags: <defaults>
</compile_context>

<pallas_src>
import jax
import jax.numpy as jnp
from jax.experimental import pallas as pl
from jax.experimental.pallas import tpu as pltpu


# ---------------------------------------------------------------------------
# Per-generation tuning knobs (pure memory-bound transpose + ReLU).
# ---------------------------------------------------------------------------
def _device_kind() -> str:
    try:
        return jax.devices()[0].device_kind.lower()
    except Exception:
        return ""


def _gen_params():
    """Return (tile_cap_m, tile_cap_n, tiled_vmem_limit_bytes, fused_budget_bytes)."""
    kind = _device_kind()
    if "v5 lite" in kind or "v5e" in kind or "v5lite" in kind:
        # v5e: 16 MiB default scoped VMEM; 512 tiles already amortize the
        # ~0.35us per-grid-step overhead at ~820 GB/s.  Bigger tiles risk OOM.
        return 512, 512, None, 12 * 1024 * 1024
    if "7" in kind:
        # v7x: 3.2 TB/s per TC -> big tiles to amortize fixed step cost; small
        # fused crossover so medium shapes hit the 2-TC parallel tiled path.
        return 1024, 1024, 24 << 20, 2 * 1024 * 1024
    if "v6" in kind:
        # v6e: single TC, 32 MiB default scoped VMEM.
        return 1024, 1024, 24 << 20, 16 * 1024 * 1024
    # Unknown generation (or interpret mode): conservative defaults.
    return 512, 512, None, 4 * 1024 * 1024


def _pick_tile(dim: int, cap: int) -> int:
    """Tile size for one axis.

    - whole axis if it fits under the cap (full-extent block is always legal),
    - else the largest multiple of 128 <= cap that divides `dim` (eliminates
      masked edge stores) provided it is at least half the cap,
    - else the largest multiple of 128 <= cap (lane-dense main tiles, one
      masked edge strip)."""
    if dim <= cap:
        return dim
    cap128 = max((cap // 128) * 128, 128)
    for t in range(cap128, max(cap128 // 2, 128) - 1, -128):
        if dim % t == 0:
            return t
    return cap128


def _cost_estimate(shapes_dtypes):
    flops = 0
    bytes_accessed = 0
    for (m, n), dt in shapes_dtypes:
        flops += m * n  # one max() per element
        bytes_accessed += 2 * m * n * jnp.dtype(dt).itemsize  # read + write
    return pl.CostEstimate(flops=flops, transcendentals=0,
                           bytes_accessed=bytes_accessed)


def _padded_bytes(shape, dtype):
    """Approximate VMEM footprint of a 2-D array incl. (8,128) layout padding."""
    m, n = shape
    pm = ((m + 7) // 8) * 8
    pn = ((n + 127) // 128) * 128
    return pm * pn * jnp.dtype(dtype).itemsize


# ---------------------------------------------------------------------------
# Fused small-shape path: both tensors handled in a single pallas_call
# (one custom-call launch instead of two for tiny, dispatch-bound shapes).
# ---------------------------------------------------------------------------
def _t_relu_pair_kernel(x_ref, y_ref, ox_ref, oy_ref):
    x = x_ref[...]
    y = y_ref[...]
    ox_ref[...] = jnp.maximum(jnp.transpose(x, (1, 0)), jnp.zeros((), x.dtype))
    oy_ref[...] = jnp.maximum(jnp.transpose(y, (1, 0)), jnp.zeros((), y.dtype))


def _t_relu_pair_fused(x, y):
    Mx, Nx = x.shape
    My, Ny = y.shape
    return pl.pallas_call(
        _t_relu_pair_kernel,
        out_shape=(
            jax.ShapeDtypeStruct((Nx, Mx), x.dtype),
            jax.ShapeDtypeStruct((Ny, My), y.dtype),
        ),
        # Whole-array blocks: legal because block shape == full array shape.
        in_specs=[
            pl.BlockSpec((Mx, Nx), lambda: (0, 0)),
            pl.BlockSpec((My, Ny), lambda: (0, 0)),
        ],
        out_specs=(
            pl.BlockSpec((Nx, Mx), lambda: (0, 0)),
            pl.BlockSpec((Ny, My), lambda: (0, 0)),
        ),
        cost_estimate=_cost_estimate([((Mx, Nx), x.dtype), ((My, Ny), y.dtype)]),
    )(x, y)


# ---------------------------------------------------------------------------
# Tiled large-shape path: 128-aligned (shape-aware) tiles, swapped output
# index_map, megacore-parallel grid (v7x shards grid points across both TCs).
# ---------------------------------------------------------------------------
def _t_relu_tile_kernel(x_ref, o_ref):
    x = x_ref[...]
    o_ref[...] = jnp.maximum(jnp.transpose(x, (1, 0)), jnp.zeros((), x.dtype))


def _t_relu_tiled(x):
    """relu(x.T) for large 2-D arrays, tiled so VMEM use stays bounded and
    both the (tm, tn) input block and the (tn, tm) transposed output block are
    lane-dense (no masked vst on the main tiles)."""
    M, N = x.shape
    cap_m, cap_n, vmem_limit, _ = _gen_params()
    tm = _pick_tile(M, cap_m)
    tn = _pick_tile(N, cap_n)
    grid = (pl.cdiv(M, tm), pl.cdiv(N, tn))

    cp_kwargs = dict(dimension_semantics=("parallel", "parallel"))
    if vmem_limit is not None:
        cp_kwargs["vmem_limit_bytes"] = vmem_limit

    return pl.pallas_call(
        _t_relu_tile_kernel,
        out_shape=jax.ShapeDtypeStruct((N, M), x.dtype),
        grid=grid,
        in_specs=[pl.BlockSpec((tm, tn), lambda i, j: (i, j))],
        out_specs=pl.BlockSpec((tn, tm), lambda i, j: (j, i)),
        compiler_params=pltpu.CompilerParams(**cp_kwargs),
        cost_estimate=_cost_estimate([((M, N), x.dtype)]),
    )(x)


def model_forward(x, y):
    """Pallas equivalent of:  (F.relu(torch.t(x)), F.relu(torch.t(y)))."""
    # TODO(synk): torch.t also accepts 0-D/1-D tensors (returned unchanged);
    # this implementation covers the 2-D case used by the test module.
    assert x.ndim == 2 and y.ndim == 2, "torch.t semantics implemented for 2-D"

    _, _, _, fused_budget = _gen_params()
    # inputs + outputs, including (8,128) layout padding.
    total_bytes = 2 * (_padded_bytes(x.shape, x.dtype)
                       + _padded_bytes(y.shape, y.dtype))
    if total_bytes <= fused_budget:
        return _t_relu_pair_fused(x, y)
    # Large / medium inputs: per-tensor tiled, lane-dense, megacore-parallel.
    return _t_relu_tiled(x), _t_relu_tiled(y)


if __name__ == "__main__":
    key = jax.random.PRNGKey(0)
    kx, ky, kx2, ky2 = jax.random.split(key, 4)

    # Small 2-D shapes consistent with torch.t (which only accepts <=2-D).
    x = jax.random.normal(kx, (8, 32), dtype=jnp.float32)
    y = jax.random.normal(ky, (16, 64), dtype=jnp.float32)

    out_x, out_y = jax.jit(model_forward)(x, y)
    jax.block_until_ready((out_x, out_y))

    ref_x = jnp.maximum(x.T, 0.0)
    ref_y = jnp.maximum(y.T, 0.0)
    assert out_x.shape == (32, 8) and out_y.shape == (64, 16)
    assert jnp.allclose(out_x, ref_x) and jnp.allclose(out_y, ref_y)

    # Larger shapes: exercise the tiled path (exceeds every fused budget) with
    # a non-multiple-of-1024 column count to hit the shape-aware tile picker.
    x2 = jax.random.normal(kx2, (2048, 1280), dtype=jnp.float32)
    y2 = jax.random.normal(ky2, (1536, 1152), dtype=jnp.float32)
    out_x2, out_y2 = jax.jit(model_forward)(x2, y2)
    jax.block_until_ready((out_x2, out_y2))
    assert out_x2.shape == (1280, 2048) and out_y2.shape == (1152, 1536)
    assert jnp.allclose(out_x2, jnp.maximum(x2.T, 0.0))
    assert jnp.allclose(out_y2, jnp.maximum(y2.T, 0.0))

    print("KERNEL_OK")
</pallas_src>

<mosaic_0001>
module attributes {stable_mosaic.version = 11 : i64} {
  func.func @_t_relu_pair_kernel(%arg0: memref<8x32xf32, #tpu.memory_space<vmem>>, %arg1: memref<16x64xf32, #tpu.memory_space<vmem>>, %arg2: memref<32x8xf32, #tpu.memory_space<vmem>>, %arg3: memref<64x16xf32, #tpu.memory_space<vmem>>) attributes {dimension_semantics = [], scalar_prefetch = 0 : i64, scratch_operands = 0 : i64, tpu.core_type = #tpu.core_type<tc>} {
    %c0 = arith.constant 0 : index
    %c0_0 = arith.constant 0 : index
    %0 = vector.load %arg0[%c0, %c0_0] : memref<8x32xf32, #tpu.memory_space<vmem>>, vector<8x32xf32>
    %c0_1 = arith.constant 0 : index
    %c0_2 = arith.constant 0 : index
    %1 = vector.load %arg1[%c0_1, %c0_2] : memref<16x64xf32, #tpu.memory_space<vmem>>, vector<16x64xf32>
    %2 = tpu.transpose %0, [1, 0] : vector<8x32xf32> -> vector<32x8xf32>
    %cst = arith.constant 0.000000e+00 : f32
    %3 = vector.broadcast %cst : f32 to vector<32x8xf32>
    %4 = arith.maximumf %2, %3 : vector<32x8xf32>
    %c0_3 = arith.constant 0 : index
    %c0_4 = arith.constant 0 : index
    %5 = vector.load %arg2[%c0_3, %c0_4] : memref<32x8xf32, #tpu.memory_space<vmem>>, vector<32x8xf32>
    tpu.vector_store %arg2[%c0_3, %c0_4], %4 {strides = array<i32>} : memref<32x8xf32, #tpu.memory_space<vmem>>, vector<32x8xf32>,
    %6 = tpu.transpose %1, [1, 0] : vector<16x64xf32> -> vector<64x16xf32>
    %cst_5 = arith.constant 0.000000e+00 : f32
    %7 = vector.broadcast %cst_5 : f32 to vector<64x16xf32>
    %8 = arith.maximumf %6, %7 : vector<64x16xf32>
    %c0_6 = arith.constant 0 : index
    %c0_7 = arith.constant 0 : index
    %9 = vector.load %arg3[%c0_6, %c0_7] : memref<64x16xf32, #tpu.memory_space<vmem>>, vector<64x16xf32>
    tpu.vector_store %arg3[%c0_6, %c0_7], %8 {strides = array<i32>} : memref<64x16xf32, #tpu.memory_space<vmem>>, vector<64x16xf32>,
    return
  }
}

</mosaic_0001>

<bundles_post_ra>
// kernel: model_forward.1
= control target key start
LH: loop header
LB: loop body
LE: loop exit
PB: predicated region body
PF: predicated region fallthrough
CT: control target
= control target key end

     0   :  { %9 = vsyncpa [#allocation3], 0  ;;  %s281_s0 = inlined_call_operand.hbm [shape: f32[8,32], index: 0, kind: input, shape index: {}]   ;;  %s282_s1 = inlined_call_operand.hbm [shape: f32[16,64], index: 1, kind: input, shape index: {}]   ;;  %s283_s2 = inlined_call_operand.vmem [shape: f32[32,8], index: 2, kind: output, shape index: {0}]   ;;  %s284_s3 = inlined_call_operand.vmem [shape: f32[64,16], index: 3, kind: output, shape index: {1}]  }
   0x1   :  { %s16_s14 = sshll.u32 %s281_s0, 4  ;;  %s17_s14 = int_to_ptr.hbm [resolvable:$true] %s16_s14 }
   0x2   :  { %10 = vsyncpa [#allocation5], 0  ;;  %s203_s15 = smov [#allocation2]   ;;  %s26_s19 = sshll.u32 %s282_s1, 4  ;;  %s27_s19 = int_to_ptr.hbm [resolvable:$true] %s26_s19 }
   0x3   :  { %s18_s16 = sshll.u32 %s203_s15, 4  ;;  %s204_s20 = smov [#allocation4]   ;;  %s19_s16 = int_to_ptr.vmem [resolvable:$true] %s18_s16 }
   0x4   :  { %21 = dma.hbm_to_vmem [thread:$0]  %s17_s14, 128, %s19_s16, [#allocation3]  }
   0x5   :  { %s28_s21 = sshll.u32 %s204_s20, 4  ;;  %s205_s22 = smov 128   ;;  %s29_s21 = int_to_ptr.vmem [resolvable:$true] %s28_s21 }
   0x6   :  { %s206_s23 = smov 8  }
   0x7   :  { %34 = dma.hbm_to_vmem [thread:$0]  %s27_s19, 256, %s29_s21, [#allocation5], %s205_s22, %s205_s22, %s206_s23  }
   0x8   :  { %199 = dma.done.wait [#allocation3], 128  }
   0x9   :  { %200 = vsyncadd [#allocation3], 4294967168 }
   0xa   :  { %201 = dma.done.wait [#allocation5], 256  }
   0xb   :  { %202 = vsyncadd [#allocation5], 4294967040  ;;  %v44_v0 = vld [vmem:[#allocation4] sm:$0xff]  ;;  %v43_v1 = vld [vmem:[#allocation2] sm:$0xff]  ;;  %vm127_vm0 = vcmask 130048   ;;  %vm82_vm1 = vcmask 64512  }
   0xc   :  { %87 = vxpose.xlu0.b32.start [1/2] (short) (narrow) %v44_v0, 64  ;;  %46 = vxpose.xlu1.b32.start.end [1/1] (short) (narrow) %v43_v1, 32  ;;  %v45_v2 = vld [vmem:[#allocation4 + $0x8] sm:$0xff] }
  0x14   :  { %88 = vxpose.xlu0.b32.end [2/2] (short) (narrow) %v45_v2, 64 }
  0xb0   :  { %v103_v3 = vpop.trf.xlu0  ;;  %v62_v4 = vpop.trf.xlu1 }
  0xb1   :  { %v119_v5 = vmax.f32 %v103_v3, 0.0  ;;  %v78_v6 = vmax.f32 %v62_v4, 0.0 }
  0xb3   :  { %128 = vst.msk [vmem:[%s284_s3] sm:$0xff] %vm127_vm0, %v119_v5 }
  0xb4   :  { %83 = vst.msk [vmem:[%s283_s2] sm:$0xff] %vm82_vm1, %v78_v6 }
  0xb8   :  { %v104_v7 = vpop.trf.xlu0  ;;  %v63_v8 = vpop.trf.xlu1 }
  0xb9   :  { %v120_v9 = vmax.f32 %v104_v7, 0.0  ;;  %v79_v10 = vmax.f32 %v63_v8, 0.0 }
  0xbb   :  { %129 = vst.msk [vmem:[%s284_s3 + $0x8] sm:$0xff] %vm127_vm0, %v120_v9 }
  0xbc   :  { %84 = vst.msk [vmem:[%s283_s2 + $0x8] sm:$0xff] %vm82_vm1, %v79_v10 }
  0xc0   :  { %v105_v11 = vpop.trf.xlu0  ;;  %v64_v12 = vpop.trf.xlu1 }
  0xc1   :  { %v121_v13 = vmax.f32 %v105_v11, 0.0  ;;  %v80_v14 = vmax.f32 %v64_v12, 0.0 }
  0xc3   :  { %130 = vst.msk [vmem:[%s284_s3 + $0x10] sm:$0xff] %vm127_vm0, %v121_v13 }
  0xc4   :  { %85 = vst.msk [vmem:[%s283_s2 + $0x10] sm:$0xff] %vm82_vm1, %v80_v14 }
  0xc8   :  { %v106_v15 = vpop.trf.xlu0  ;;  %v65_v16 = vpop.trf.xlu1 }
  0xc9   :  { %v122_v17 = vmax.f32 %v106_v15, 0.0  ;;  %v81_v18 = vmax.f32 %v65_v16, 0.0 }
  0xcb   :  { %131 = vst.msk [vmem:[%s284_s3 + $0x18] sm:$0xff] %vm127_vm0, %v122_v17 }
  0xcc   :  { %86 = vst.msk [vmem:[%s283_s2 + $0x18] sm:$0xff] %vm82_vm1, %v81_v18 }
  0xd0   :  { %v107_v19 = vpop.trf.xlu0 }
  0xd1   :  { %v123_v20 = vmax.f32 %v107_v19, 0.0 }
  0xd3   :  { %132 = vst.msk [vmem:[%s284_s3 + $0x20] sm:$0xff] %vm127_vm0, %v123_v20 }
  0xd8   :  { %v108_v21 = vpop.trf.xlu0 }
  0xd9   :  { %v124_v22 = vmax.f32 %v108_v21, 0.0 }
  0xdb   :  { %133 = vst.msk [vmem:[%s284_s3 + $0x28] sm:$0xff] %vm127_vm0, %v124_v22 }
  0xe0   :  { %v109_v23 = vpop.trf.xlu0 }
  0xe1   :  { %v125_v24 = vmax.f32 %v109_v23, 0.0 }
  0xe3   :  { %134 = vst.msk [vmem:[%s284_s3 + $0x30] sm:$0xff] %vm127_vm0, %v125_v24 }
  0xe8   :  { %v110_v25 = vpop.trf.xlu0 }
  0xe9   :  { %v126_v26 = vmax.f32 %v110_v25, 0.0 }
  0xeb   :  { %135 = vst.msk [vmem:[%s284_s3 + $0x38] sm:$0xff] %vm127_vm0, %v126_v26 }
  0xec   :  { %144 = vsyncpa [#allocation3], 1 }
  0xed   :  { %145 = vsyncpa [#allocation5], 1 }

</bundles_post_ra>
